<compile_context>
chip_gen: v7x
topology: tpu7x:2x2x1
jax: 0.10.0
libtpu: 0.0.40
codegen_flags: <defaults>
</compile_context>

<pallas_src>
import jax
import jax.numpy as jnp
from jax.experimental import pallas as pl
from jax.experimental.pallas import tpu as pltpu

INPUT_SIZE = 49
LAYER_1 = 64
LAYER_2 = 32
LAYER_3 = 16
NUM_CLASSES = 30

DEFAULT_TILE_B = 8192                   # multiple of 8; lane-padded VMEM (incl. double
                                        # buffers + intermediates) ~20-28 MiB at 8192
VMEM_LIMIT_BYTES = 64 * 1024 * 1024     # explicit cap: > v5e's 16 MiB scoped default,
                                        # == v7x physical, well under v5e/v6e physical


def _round_up(x, m):
    return (x + m - 1) // m * m


def _choose_tile_b(batch, max_tile=DEFAULT_TILE_B):
    """Multiple of 8, <= max_tile, and >= 2 tiles whenever the batch allows it
    (so the 'parallel' grid axis can land on both v7x TensorCores)."""
    b8 = _round_up(max(batch, 1), 8)
    if b8 <= 8:
        return 8
    two_tiles = _round_up(pl.cdiv(b8, 2), 8)
    return int(min(max_tile, two_tiles))


def mlp_kernel(x_ref,
               w1_ref, b1_ref,
               w2_ref, b2_ref,
               w3_ref, b3_ref,
               w4_ref, b4_ref,
               o_ref):
    # x arrives in f32 straight from HBM; cast to bf16 on-chip for the bf16 MXU path.
    # Matmuls accumulate in f32 (preferred_element_type); bias add + ReLU in f32;
    # activations recast to bf16 between layers (tolerance documented in __main__).
    def layer(h_bf16, w_ref, b_ref):
        acc = jnp.dot(h_bf16, w_ref[...], preferred_element_type=jnp.float32)
        return acc + b_ref[...]

    h = x_ref[...].astype(jnp.bfloat16)
    h = jnp.maximum(layer(h, w1_ref, b1_ref), 0.0).astype(jnp.bfloat16)
    h = jnp.maximum(layer(h, w2_ref, b2_ref), 0.0).astype(jnp.bfloat16)
    h = jnp.maximum(layer(h, w3_ref, b3_ref), 0.0).astype(jnp.bfloat16)
    o_ref[...] = layer(h, w4_ref, b4_ref).astype(o_ref.dtype)


def basenet_forward(x, params, tile_b=None):
    """x: [B, 49] float32 -> logits [B, 30] float32."""
    (w1, b1), (w2, b2), (w3, b3), (w4, b4) = params
    B = x.shape[0]

    if tile_b is None:
        tile_b = _choose_tile_b(B)
    tile_b = max(8, min(_round_up(tile_b, 8), _round_up(B, 8)))

    padded_b = _round_up(B, 8)              # sublane multiple only (<= 7 extra rows)
    num_tiles = pl.cdiv(padded_b, tile_b)   # == cdiv(B, tile_b) since tile_b % 8 == 0

    # x stays f32 on the DMA path (bf16 cast happens inside the kernel);
    # weights bf16 for the MXU; biases f32 for the f32 epilogue.
    x = x.astype(jnp.float32)
    w1b, w2b, w3b, w4b = (w.astype(jnp.bfloat16) for w in (w1, w2, w3, w4))
    b1f, b2f, b3f, b4f = (b.reshape(1, -1).astype(jnp.float32)
                          for b in (b1, b2, b3, b4))

    def const_spec(arr):
        # Whole array, same block every grid step -> DMA'd once, stays VMEM-resident.
        return pl.BlockSpec(arr.shape, lambda i: (0, 0))

    in_specs = [
        pl.BlockSpec((tile_b, INPUT_SIZE), lambda i: (i, 0)),
        const_spec(w1b), const_spec(b1f),
        const_spec(w2b), const_spec(b2f),
        const_spec(w3b), const_spec(b3f),
        const_spec(w4b), const_spec(b4f),
    ]
    out_specs = pl.BlockSpec((tile_b, NUM_CLASSES), lambda i: (i, 0))

    flops_per_row = 2 * (INPUT_SIZE * LAYER_1 + LAYER_1 * LAYER_2
                         + LAYER_2 * LAYER_3 + LAYER_3 * NUM_CLASSES)
    weight_bytes = sum(int(a.size) * a.dtype.itemsize
                       for a in (w1b, b1f, w2b, b2f, w3b, b3f, w4b, b4f))
    cost = pl.CostEstimate(
        flops=flops_per_row * padded_b,
        transcendentals=0,
        bytes_accessed=(B * INPUT_SIZE * 4            # f32 x in (no wrapper copy)
                        + padded_b * NUM_CLASSES * 4  # f32 logits out
                        + weight_bytes),
    )

    out = pl.pallas_call(
        mlp_kernel,
        out_shape=jax.ShapeDtypeStruct((padded_b, NUM_CLASSES), jnp.float32),
        grid=(num_tiles,),
        in_specs=in_specs,
        out_specs=out_specs,
        cost_estimate=cost,
        compiler_params=pltpu.CompilerParams(
            dimension_semantics=("parallel",),   # megacore sharding on v7x
            vmem_limit_bytes=VMEM_LIMIT_BYTES,
        ),
    )(x, w1b, b1f, w2b, b2f, w3b, b3f, w4b, b4f)

    return out[:B]


def init_linear(key, fan_in, fan_out):
    # PyTorch nn.Linear default init: U(-1/sqrt(fan_in), 1/sqrt(fan_in)).
    kw, kb = jax.random.split(key)
    bound = 1.0 / jnp.sqrt(jnp.float32(fan_in))
    # stored as [in, out] so the kernel computes x @ W
    w = jax.random.uniform(kw, (fan_in, fan_out), jnp.float32, -bound, bound)
    b = jax.random.uniform(kb, (1, fan_out), jnp.float32, -bound, bound)
    return w, b


def init_params(key):
    k1, k2, k3, k4 = jax.random.split(key, 4)
    return (
        init_linear(k1, INPUT_SIZE, LAYER_1),
        init_linear(k2, LAYER_1, LAYER_2),
        init_linear(k3, LAYER_2, LAYER_3),
        init_linear(k4, LAYER_3, NUM_CLASSES),
    )


def reference_forward(x, params):
    # Reference uses the same bf16-cast x/weights (upcast to f32 for the math) so the
    # comparison isolates the kernel's intermediate bf16 rounding.
    (w1, b1), (w2, b2), (w3, b3), (w4, b4) = params

    def c(a):
        return a.astype(jnp.bfloat16).astype(jnp.float32)

    h = jnp.maximum(c(x) @ c(w1) + b1, 0.0)
    h = jnp.maximum(h @ c(w2) + b2, 0.0)
    h = jnp.maximum(h @ c(w3) + b3, 0.0)
    return h @ c(w4) + b4


if __name__ == "__main__":
    key = jax.random.PRNGKey(0)
    kx, kp = jax.random.split(key)

    batch = 20   # exercises 2 grid tiles + a ragged (non-multiple-of-8) batch
    x = jax.random.normal(kx, (batch, INPUT_SIZE), jnp.float32)
    params = init_params(kp)

    out = basenet_forward(x, params)
    out = jax.block_until_ready(out)

    ref = reference_forward(x, params)
    assert out.shape == (batch, NUM_CLASSES), out.shape
    # bf16 activations between layers -> loosen tolerance vs the f32-activation ref.
    assert jnp.allclose(out, ref, atol=3e-2, rtol=3e-2), "mismatch vs reference"

    print("KERNEL_OK")
</pallas_src>

<mosaic_0001>
module attributes {stable_mosaic.version = 11 : i64} {
  func.func @mlp_kernel(%arg0: i32, %arg1: memref<16x49xf32, #tpu.memory_space<vmem>>, %arg2: memref<49x64xbf16, #tpu.memory_space<vmem>>, %arg3: memref<1x64xf32, #tpu.memory_space<vmem>>, %arg4: memref<64x32xbf16, #tpu.memory_space<vmem>>, %arg5: memref<1x32xf32, #tpu.memory_space<vmem>>, %arg6: memref<32x16xbf16, #tpu.memory_space<vmem>>, %arg7: memref<1x16xf32, #tpu.memory_space<vmem>>, %arg8: memref<16x30xbf16, #tpu.memory_space<vmem>>, %arg9: memref<1x30xf32, #tpu.memory_space<vmem>>, %arg10: memref<16x30xf32, #tpu.memory_space<vmem>>) attributes {dimension_semantics = [#tpu.dimension_semantics<parallel>], iteration_bounds = array<i64: 2>, scalar_prefetch = 0 : i64, scratch_operands = 0 : i64, tpu.core_type = #tpu.core_type<tc>, window_params = [{transform_indices = @transform_0, window_bounds = array<i64: 16, 49>}, {pipeline_mode = #tpu.pipeline_mode<synchronous>, transform_indices = @transform_1, window_bounds = array<i64: 49, 64>}, {pipeline_mode = #tpu.pipeline_mode<synchronous>, transform_indices = @transform_2, window_bounds = array<i64: 1, 64>}, {pipeline_mode = #tpu.pipeline_mode<synchronous>, transform_indices = @transform_3, window_bounds = array<i64: 64, 32>}, {pipeline_mode = #tpu.pipeline_mode<synchronous>, transform_indices = @transform_4, window_bounds = array<i64: 1, 32>}, {pipeline_mode = #tpu.pipeline_mode<synchronous>, transform_indices = @transform_5, window_bounds = array<i64: 32, 16>}, {pipeline_mode = #tpu.pipeline_mode<synchronous>, transform_indices = @transform_6, window_bounds = array<i64: 1, 16>}, {pipeline_mode = #tpu.pipeline_mode<synchronous>, transform_indices = @transform_7, window_bounds = array<i64: 16, 30>}, {pipeline_mode = #tpu.pipeline_mode<synchronous>, transform_indices = @transform_8, window_bounds = array<i64: 1, 30>}, {transform_indices = @transform_9, window_bounds = array<i64: 16, 30>}]} {
    %c0 = arith.constant 0 : index
    %c0_0 = arith.constant 0 : index
    %0 = vector.load %arg1[%c0, %c0_0] : memref<16x49xf32, #tpu.memory_space<vmem>>, vector<16x49xf32>
    %1 = arith.truncf %0 : vector<16x49xf32> to vector<16x49xbf16>
    %c0_1 = arith.constant 0 : index
    %c0_2 = arith.constant 0 : index
    %2 = vector.load %arg2[%c0_1, %c0_2] : memref<49x64xbf16, #tpu.memory_space<vmem>>, vector<49x64xbf16>
    %cst = arith.constant dense<0.000000e+00> : vector<16x64xf32>
    %3 = tpu.matmul %1, %2, %cst {dimension_numbers = #tpu.dot_dimension_numbers<[1], [0], [0], [1], [0, 0, 1, 1], [], []>} : vector<16x49xbf16>, vector<49x64xbf16>, vector<16x64xf32> -> vector<16x64xf32>
    %c0_3 = arith.constant 0 : index
    %c0_4 = arith.constant 0 : index
    %4 = vector.load %arg3[%c0_3, %c0_4] : memref<1x64xf32, #tpu.memory_space<vmem>>, vector<1x64xf32>
    %5 = vector.broadcast %4 : vector<1x64xf32> to vector<16x64xf32>
    %6 = arith.addf %3, %5 : vector<16x64xf32>
    %cst_5 = arith.constant 0.000000e+00 : f32
    %7 = vector.broadcast %cst_5 : f32 to vector<16x64xf32>
    %8 = arith.maximumf %6, %7 : vector<16x64xf32>
    %9 = arith.truncf %8 : vector<16x64xf32> to vector<16x64xbf16>
    %c0_6 = arith.constant 0 : index
    %c0_7 = arith.constant 0 : index
    %10 = vector.load %arg4[%c0_6, %c0_7] : memref<64x32xbf16, #tpu.memory_space<vmem>>, vector<64x32xbf16>
    %cst_8 = arith.constant dense<0.000000e+00> : vector<16x32xf32>
    %11 = tpu.matmul %9, %10, %cst_8 {dimension_numbers = #tpu.dot_dimension_numbers<[1], [0], [0], [1], [0, 0, 1, 1], [], []>} : vector<16x64xbf16>, vector<64x32xbf16>, vector<16x32xf32> -> vector<16x32xf32>
    %c0_9 = arith.constant 0 : index
    %c0_10 = arith.constant 0 : index
    %12 = vector.load %arg5[%c0_9, %c0_10] : memref<1x32xf32, #tpu.memory_space<vmem>>, vector<1x32xf32>
    %13 = vector.broadcast %12 : vector<1x32xf32> to vector<16x32xf32>
    %14 = arith.addf %11, %13 : vector<16x32xf32>
    %cst_11 = arith.constant 0.000000e+00 : f32
    %15 = vector.broadcast %cst_11 : f32 to vector<16x32xf32>
    %16 = arith.maximumf %14, %15 : vector<16x32xf32>
    %17 = arith.truncf %16 : vector<16x32xf32> to vector<16x32xbf16>
    %c0_12 = arith.constant 0 : index
    %c0_13 = arith.constant 0 : index
    %18 = vector.load %arg6[%c0_12, %c0_13] : memref<32x16xbf16, #tpu.memory_space<vmem>>, vector<32x16xbf16>
    %cst_14 = arith.constant dense<0.000000e+00> : vector<16x16xf32>
    %19 = tpu.matmul %17, %18, %cst_14 {dimension_numbers = #tpu.dot_dimension_numbers<[1], [0], [0], [1], [0, 0, 1, 1], [], []>} : vector<16x32xbf16>, vector<32x16xbf16>, vector<16x16xf32> -> vector<16x16xf32>
    %c0_15 = arith.constant 0 : index
    %c0_16 = arith.constant 0 : index
    %20 = vector.load %arg7[%c0_15, %c0_16] : memref<1x16xf32, #tpu.memory_space<vmem>>, vector<1x16xf32>
    %21 = vector.broadcast %20 : vector<1x16xf32> to vector<16x16xf32>
    %22 = arith.addf %19, %21 : vector<16x16xf32>
    %cst_17 = arith.constant 0.000000e+00 : f32
    %23 = vector.broadcast %cst_17 : f32 to vector<16x16xf32>
    %24 = arith.maximumf %22, %23 : vector<16x16xf32>
    %25 = arith.truncf %24 : vector<16x16xf32> to vector<16x16xbf16>
    %c0_18 = arith.constant 0 : index
    %c0_19 = arith.constant 0 : index
    %26 = vector.load %arg8[%c0_18, %c0_19] : memref<16x30xbf16, #tpu.memory_space<vmem>>, vector<16x30xbf16>
    %cst_20 = arith.constant dense<0.000000e+00> : vector<16x30xf32>
    %27 = tpu.matmul %25, %26, %cst_20 {dimension_numbers = #tpu.dot_dimension_numbers<[1], [0], [0], [1], [0, 0, 1, 1], [], []>} : vector<16x16xbf16>, vector<16x30xbf16>, vector<16x30xf32> -> vector<16x30xf32>
    %c0_21 = arith.constant 0 : index
    %c0_22 = arith.constant 0 : index
    %28 = vector.load %arg9[%c0_21, %c0_22] : memref<1x30xf32, #tpu.memory_space<vmem>>, vector<1x30xf32>
    %29 = vector.broadcast %28 : vector<1x30xf32> to vector<16x30xf32>
    %30 = arith.addf %27, %29 : vector<16x30xf32>
    %c0_23 = arith.constant 0 : index
    %c0_24 = arith.constant 0 : index
    %31 = vector.load %arg10[%c0_23, %c0_24] : memref<16x30xf32, #tpu.memory_space<vmem>>, vector<16x30xf32>
    tpu.vector_store %arg10[%c0_23, %c0_24], %30 {strides = array<i32>} : memref<16x30xf32, #tpu.memory_space<vmem>>, vector<16x30xf32>,
    return
  }
  func.func @transform_0(%arg0: i32) -> (i32, i32) {
    %c0_i32 = arith.constant 0 : i32
    %c0_i32_0 = arith.constant 0 : i32
    return %arg0, %c0_i32 : i32, i32
  }
  func.func @transform_1(%arg0: i32) -> (i32, i32) {
    %c0_i32 = arith.constant 0 : i32
    %c0_i32_0 = arith.constant 0 : i32
    %c0_i32_1 = arith.constant 0 : i32
    return %c0_i32, %c0_i32_0 : i32, i32
  }
  func.func @transform_2(%arg0: i32) -> (i32, i32) {
    %c0_i32 = arith.constant 0 : i32
    %c0_i32_0 = arith.constant 0 : i32
    %c0_i32_1 = arith.constant 0 : i32
    return %c0_i32, %c0_i32_0 : i32, i32
  }
  func.func @transform_3(%arg0: i32) -> (i32, i32) {
    %c0_i32 = arith.constant 0 : i32
    %c0_i32_0 = arith.constant 0 : i32
    %c0_i32_1 = arith.constant 0 : i32
    return %c0_i32, %c0_i32_0 : i32, i32
  }
  func.func @transform_4(%arg0: i32) -> (i32, i32) {
    %c0_i32 = arith.constant 0 : i32
    %c0_i32_0 = arith.constant 0 : i32
    %c0_i32_1 = arith.constant 0 : i32
    return %c0_i32, %c0_i32_0 : i32, i32
  }
  func.func @transform_5(%arg0: i32) -> (i32, i32) {
    %c0_i32 = arith.constant 0 : i32
    %c0_i32_0 = arith.constant 0 : i32
    %c0_i32_1 = arith.constant 0 : i32
    return %c0_i32, %c0_i32_0 : i32, i32
  }
  func.func @transform_6(%arg0: i32) -> (i32, i32) {
    %c0_i32 = arith.constant 0 : i32
    %c0_i32_0 = arith.constant 0 : i32
    %c0_i32_1 = arith.constant 0 : i32
    return %c0_i32, %c0_i32_0 : i32, i32
  }
  func.func @transform_7(%arg0: i32) -> (i32, i32) {
    %c0_i32 = arith.constant 0 : i32
    %c0_i32_0 = arith.constant 0 : i32
    %c0_i32_1 = arith.constant 0 : i32
    return %c0_i32, %c0_i32_0 : i32, i32
  }
  func.func @transform_8(%arg0: i32) -> (i32, i32) {
    %c0_i32 = arith.constant 0 : i32
    %c0_i32_0 = arith.constant 0 : i32
    %c0_i32_1 = arith.constant 0 : i32
    return %c0_i32, %c0_i32_0 : i32, i32
  }
  func.func @transform_9(%arg0: i32) -> (i32, i32) {
    %c0_i32 = arith.constant 0 : i32
    %c0_i32_0 = arith.constant 0 : i32
    return %arg0, %c0_i32 : i32, i32
  }
}

</mosaic_0001>

<bundles_post_ra>
// kernel: tpu_custom_call.1
= control target key start
LH: loop header
LB: loop body
LE: loop exit
PB: predicated region body
PF: predicated region fallthrough
CT: control target
= control target key end

     0   :  { %s2004_s0 = inlined_call_operand.hbm [shape: f32[20,49], index: 0, kind: input, shape index: {}]   ;;  %s2005_s1 = inlined_call_operand.hbm [shape: bf16[49,64], index: 1, kind: input, shape index: {}]   ;;  %s2006_s2 = inlined_call_operand.hbm [shape: f32[1,64], index: 2, kind: input, shape index: {}]   ;;  %s2007_s3 = inlined_call_operand.hbm [shape: bf16[64,32], index: 3, kind: input, shape index: {}]   ;;  %s2008_s4 = inlined_call_operand.hbm [shape: f32[1,32], index: 4, kind: input, shape index: {}]   ;;  %s2009_s5 = inlined_call_operand.hbm [shape: bf16[32,16], index: 5, kind: input, shape index: {}]   ;;  %s2010_s6 = inlined_call_operand.hbm [shape: f32[1,16], index: 6, kind: input, shape index: {}]   ;;  %s2011_s7 = inlined_call_operand.hbm [shape: bf16[16,30], index: 7, kind: input, shape index: {}]   ;;  %s2012_s8 = inlined_call_operand.hbm [shape: f32[1,30], index: 8, kind: input, shape index: {}]   ;;  %s2013_s9 = inlined_call_operand.hbm [shape: f32[24,30], index: 9, kind: output, shape index: {}]  }
   0x1   :  { %2026 = sst [smem:[#allocation30_spill]] %s2005_s1 }
   0x2   :  { %2027 = sst [smem:[#allocation31_spill]] %s2013_s9 }
   0x3   :  { %14 = vsyncpa [#allocation3], 0 }
   0x4   :  { %16 = vsyncpa [#allocation3 + $0x1], 0 }
   0x5   :  { %17 = vsyncpa [#allocation6], 0 }
   0x6   :  { %18 = vsyncpa [#allocation9], 0 }
   0x7   :  { %19 = vsyncpa [#allocation12], 0 }
   0x8   :  { %20 = vsyncpa [#allocation15], 0 }
   0x9   :  { %21 = vsyncpa [#allocation4], 0 }
   0xa   :  { %23 = vsyncpa [#allocation4 + $0x1], 0  ;;  %s1615_s30 = smov 0   ;;  %s1617_s10 = smov 0  }
   0xb   :  { %s1619_s11 = smov 0   ;;  %s1621_s12 = smov 0  }
   0xc LB: > { %2028 = sst [smem:[#allocation24_spill]] %s1532_s30  ;;  %s1636_s13 = sadd.s32 4294967295, %s1544_s12   ;;  %s1544_s12 = sphi %s1621_s12, %s2061_s12   ;;  %s1540_s11 = sphi %s1619_s11, %s2065_s11   ;;  %s1536_s10 = sphi %s1617_s10, %s2064_s10   ;;  %s1532_s30 = sphi %s1615_s30, %s2063_s30  }
   0xd   : > { %2029 = sst [smem:[#allocation25_spill]] %s1636_s13  ;;  %s958_s14 = sadd.s32 4294967294, %s1544_s12  }
   0xe   : > { %s1640_s15 = sadd.s32 1, %s1544_s12   ;;  %s36_s16 = sadd.s32 1, %s1540_s11 }
   0xf   : > { %2030 = sst [smem:[#allocation26_spill]] %s1640_s15  ;;  %s33_s17 = ssub.s32 %s1544_s12, %s1640_s15 }
  0x10   : > { %p43_p0 = scmp.ne.s32.totalorder %s1540_s11, %s1536_s10  ;;  %p34_p1 = scmp.eq.s32.totalorder %s33_s17, 0 }
  0x11   : > { %p44_p2 = scmp.eq.s32.totalorder %s1544_s12, 0  ;;  %p49_p3 = scmp.ne.s32.totalorder %s1536_s10, %s1532_s30 }
  0x12   : > { %p2016_p4 = scmp.eq.s32.totalorder %s1636_s13, 0  ;;  %p241_p7 = scmp.eq.s32.totalorder %s1636_s13, 1 }
  0x13   : > { %s1652_s18 = scalar_select %p34_p1, %s1540_s11, %s36_s16  }
  0x14   : > { %p1654_p5 = por %p44_p2, %p43_p0  ;;  %p1660_p6 = por %p2016_p4, %p49_p3 }
  0x15   : > { %2031 = sst [smem:[#allocation27_spill]] %s1652_s18  ;;  %p247_p8 = scmp.eq.s32.totalorder %s958_s14, 1 }
  0x16   : > { %s2032_s19 = scalar_select %p1654_p5, 1, 0 }
  0x17   : > { %s2033_s20 = scalar_select %p1660_p6, 1, 0 }
  0x18   : > { %p959_p9 = scmp.ge.s32.totalorder %s1544_s12, 1  ;;  %p254_p10 = scmp.lt.s32.totalorder %s1544_s12, 3 }
  0x19   : > { %p1667_p11 = por %p241_p7, %p43_p0  ;;  %p1671_p12 = por %p247_p8, %p49_p3 }
  0x1a   : > { %p1675_p13 = pnand %p959_p9, %p254_p10  ;;  %s1546_s24 = smov [#allocation5]  }
  0x1b   : > { %s2034_s21 = scalar_select %p1667_p11, 1, 0 }
  0x1c   : > { %s2036_s22 = scalar_select %p1671_p12, 1, 0 }
  0x1d   : > { %2035 = sst [smem:[#allocation28_spill]] %s2034_s21  ;;  %p1104_p1 = pneg %p1675_p13 }
  0x1e   : > { %2037 = sst [smem:[#allocation29_spill]] %s2036_s22  ;;  %s266_s25 = sshll.u32 %s1546_s24, 4  ;;  %s267_s25 = int_to_ptr.vmem [resolvable:$true] %s266_s25 }
  0x1f   : > { %s2038_s23 = scalar_select %p1675_p13, 1, 0 }
  0x20   : > { %p1683_p2 = pnand %p1104_p1, %p2016_p4  ;;  %s1547_s27 = smov [#allocation8]  }
  0x21   : > { %s290_s28 = sshll.u32 %s1547_s27, 4  ;;  %s2040_s1 = sld [smem:[#allocation30_spill]]  ;;  %s1687_s28 = int_to_ptr.vmem [resolvable:$true] %s290_s28 }
  0x22   : > { %p1697_p3 = pneg %p1683_p2 }
  0x27   : > { %s1210_s16 = scalar_lea.hbm %s2040_s1, 448 }
  0x28   : > { %p1211_p0 = scmp.ne.s32.totalorder %s2040_s1, %s1210_s16  ;;  %p1217_p9 = scmp.lt.u32.totalorder %s1210_s16, %s2040_s1 }
  0x2a   : > { %p1213_p7 = pnand %p1697_p3, %p1211_p0 }
  0x2c   : > { %p1214_p8 = pneg %p1213_p7 }
  0x2e   : > { %p1219_p10 = pnand %p1217_p9, %p1214_p8 }
  0x30   : > { %1222 = shalt.err (!%p1219_p10)
}
  0x31   : > { %s1223_s29 = scalar_lea.vmem %s267_s25, 448  ;;  %p1231_p11 = scmp.lt.s32.totalorder %s267_s25, %s267_s25 }
  0x32   : > { %p1224_p1 = scmp.ne.s32.totalorder %s267_s25, %s1223_s29  ;;  %p1232_p6 = scmp.lt.s32.totalorder %s1223_s29, %s1223_s29 }
  0x34   : > { %p1226_p4 = pnand %p1224_p1, %p1697_p3  ;;  %p1233_p13 = por %p1232_p6, %p1231_p11 }
  0x36   : > { %p1227_p12 = pneg %p1226_p4 }
  0x38   : > { %p1234_p5 = pnand %p1233_p13, %p1227_p12 }
  0x3a   : > { %1237 = shalt.err (!%p1234_p5)
}
  0x3b   : > { %s1548_s18 = smov 64   ;;  %s1549_s14 = smov 4  }
  0x3c   : > { %1107 = dma.hbm_to_vmem [thread:$0]  (!%p1683_p2), %s2040_s1, 448, %s267_s25, [#allocation6], %s1548_s18, %s1548_s18, %s1549_s14  }
  0x3d   : > { %s1238_s22 = scalar_lea.hbm %s2007_s3, 512 }
  0x3e   : > { %p1239_p4 = scmp.ne.s32.totalorder %s2007_s3, %s1238_s22  ;;  %p1245_p11 = scmp.lt.u32.totalorder %s1238_s22, %s2007_s3 }
  0x40   : > { %p1241_p5 = pnand %p1239_p4, %p1697_p3 }
  0x42   : > { %p1242_p6 = pneg %p1241_p5 }
  0x44   : > { %p1247_p12 = pnand %p1245_p11, %p1242_p6 }
  0x46   : > { %1250 = shalt.err (!%p1247_p12)
}
  0x47   : > { %s1251_s25 = scalar_lea.vmem %s1687_s28, 512  ;;  %p1259_p8 = scmp.lt.s32.totalorder %s1687_s28, %s1687_s28 }
  0x48   : > { %p1252_p13 = scmp.ne.s32.totalorder %s1687_s28, %s1251_s25  ;;  %p1260_p9 = scmp.lt.s32.totalorder %s1251_s25, %s1251_s25 }
  0x4a   : > { %p1254_p0 = pnand %p1252_p13, %p1697_p3  ;;  %p1261_p10 = por %p1260_p9, %p1259_p8 }
  0x4c   : > { %p1255_p7 = pneg %p1254_p0 }
  0x4e   : > { %p1262_p1 = pnand %p1261_p10, %p1255_p7 }
  0x50   : > { %1265 = shalt.err (!%p1262_p1)
}
  0x51   : > { %1113 = dma.hbm_to_vmem [thread:$0]  (!%p1683_p2), %s2007_s3, 512, %s1687_s28, [#allocation9], %s1548_s18, %s1548_s18, %s1549_s14  }
  0x52   : > { %s1550_s21 = smov [#allocation11]   ;;  %s1551_s15 = smov [#allocation14]  }
  0x53   : > { %s314_s22 = sshll.u32 %s1550_s21, 4  ;;  %s338_s16 = sshll.u32 %s1551_s15, 4  ;;  %s315_s22 = int_to_ptr.vmem [resolvable:$true] %s314_s22  ;;  %s339_s16 = int_to_ptr.vmem [resolvable:$true] %s338_s16 }
  0x54   : > { %s1266_s29 = scalar_lea.hbm %s2009_s5, 256 }
  0x55   : > { %p1267_p4 = scmp.ne.s32.totalorder %s2009_s5, %s1266_s29  ;;  %p1273_p11 = scmp.lt.u32.totalorder %s1266_s29, %s2009_s5 }
  0x57   : > { %p1269_p5 = pnand %p1267_p4, %p1697_p3 }
  0x59   : > { %p1270_p6 = pneg %p1269_p5 }
  0x5b   : > { %p1275_p12 = pnand %p1273_p11, %p1270_p6 }
  0x5d   : > { %1278 = shalt.err (!%p1275_p12)
}
  0x5e   : > { %s1279_s28 = scalar_lea.vmem %s315_s22, 256  ;;  %p1287_p8 = scmp.lt.s32.totalorder %s315_s22, %s315_s22 }
  0x5f   : > { %p1280_p13 = scmp.ne.s32.totalorder %s315_s22, %s1279_s28  ;;  %p1288_p9 = scmp.lt.s32.totalorder %s1279_s28, %s1279_s28 }
  0x61   : > { %p1282_p0 = pnand %p1280_p13, %p1697_p3  ;;  %p1289_p10 = por %p1288_p9, %p1287_p8 }
  0x63   : > { %p1283_p7 = pneg %p1282_p0 }
  0x65   : > { %p1290_p1 = pnand %p1289_p10, %p1283_p7 }
  0x67   : > { %1293 = shalt.err (!%p1290_p1)
}
  0x68   : > { %1119 = dma.hbm_to_vmem [thread:$0]  (!%p1683_p2), %s2009_s5, 256, %s315_s22, [#allocation12], %s1548_s18, %s1548_s18, %s1549_s14  }
  0x69   : > { %s1294_s15 = scalar_lea.hbm %s2011_s7, 128 }
  0x6a   : > { %p1295_p4 = scmp.ne.s32.totalorder %s2011_s7, %s1294_s15  ;;  %p1301_p11 = scmp.lt.u32.totalorder %s1294_s15, %s2011_s7 }
  0x6c   : > { %p1297_p5 = pnand %p1295_p4, %p1697_p3 }
  0x6e   : > { %p1298_p6 = pneg %p1297_p5 }
  0x70   : > { %p1303_p12 = pnand %p1301_p11, %p1298_p6 }
  0x72   : > { %1306 = shalt.err (!%p1303_p12)
}
  0x73   : > { %s1307_s9 = scalar_lea.vmem %s339_s16, 128  ;;  %p1315_p8 = scmp.lt.s32.totalorder %s339_s16, %s339_s16 }
  0x74   : > { %p1308_p13 = scmp.ne.s32.totalorder %s339_s16, %s1307_s9  ;;  %p1316_p9 = scmp.lt.s32.totalorder %s1307_s9, %s1307_s9 }
  0x76   : > { %p1310_p0 = pnand %p1308_p13, %p1697_p3  ;;  %p1317_p10 = por %p1316_p9, %p1315_p8 }
  0x78   : > { %p1311_p7 = pneg %p1310_p0 }
  0x7a   : > { %p1318_p1 = pnand %p1317_p10, %p1311_p7 }
  0x7c   : > { %1321 = shalt.err (!%p1318_p1)
}
  0x7d   : > { %1125 = dma.hbm_to_vmem [thread:$0]  (!%p1683_p2), %s2011_s7, 128, %s339_s16, [#allocation15], %s1548_s18, %s1548_s18, %s1549_s14  }
  0x7e   : > { %s1552_s1 = smov [#allocation7]   ;;  %s1553_s30 = smov [#allocation10]  }
  0x7f   : > { %s280_s13 = sshll.u32 %s1552_s1, 4  ;;  %s304_s21 = sshll.u32 %s1553_s30, 4  ;;  %s281_s13 = int_to_ptr.vmem [resolvable:$true] %s280_s13  ;;  %s305_s21 = int_to_ptr.vmem [resolvable:$true] %s304_s21 }
  0x80   : > { %s1322_s27 = scalar_lea.hbm %s2006_s2, 16 }
  0x81   : > { %p1323_p4 = scmp.ne.s32.totalorder %s2006_s2, %s1322_s27  ;;  %p1329_p11 = scmp.lt.u32.totalorder %s1322_s27, %s2006_s2 }
  0x83   : > { %p1325_p5 = pnand %p1323_p4, %p1697_p3 }
  0x85   : > { %p1326_p6 = pneg %p1325_p5 }
  0x87   : > { %p1331_p12 = pnand %p1329_p11, %p1326_p6 }
  0x89   : > { %1334 = shalt.err (!%p1331_p12)
}
  0x8a   : > { %s1335_s18 = scalar_lea.vmem %s281_s13, 16  ;;  %s1342_s14 = scalar_lea.vmem %s281_s13, 32 }
  0x8b   : > { %p1336_p13 = scmp.ne.s32.totalorder %s281_s13, %s1335_s18  ;;  %p1343_p8 = scmp.lt.s32.totalorder %s281_s13, %s281_s13 }
  0x8c   : > { %p1344_p9 = scmp.lt.s32.totalorder %s1342_s14, %s1335_s18 }
  0x8d   : > { %p1338_p0 = pnand %p1336_p13, %p1697_p3 }
  0x8e   : > { %p1345_p10 = por %p1344_p9, %p1343_p8 }
  0x8f   : > { %p1339_p7 = pneg %p1338_p0 }
  0x91   : > { %p1346_p1 = pnand %p1345_p10, %p1339_p7 }
  0x93   : > { %1349 = shalt.err (!%p1346_p1)
}
  0x94   : > { %1110 = dma.hbm_to_vmem [thread:$0]  (!%p1683_p2), %s2006_s2, 16, %s281_s13, [#allocation6]  }
  0x95   : > { %s1350_s15 = scalar_lea.hbm %s2008_s4, 16 }
  0x96   : > { %p1351_p4 = scmp.ne.s32.totalorder %s2008_s4, %s1350_s15  ;;  %p1357_p11 = scmp.lt.u32.totalorder %s1350_s15, %s2008_s4 }
  0x98   : > { %p1353_p5 = pnand %p1351_p4, %p1697_p3 }
  0x9a   : > { %p1354_p6 = pneg %p1353_p5 }
  0x9c   : > { %p1359_p12 = pnand %p1357_p11, %p1354_p6 }
  0x9e   : > { %1362 = shalt.err (!%p1359_p12)
}
  0x9f   : > { %s1363_s9 = scalar_lea.vmem %s305_s21, 16  ;;  %s1370_s13 = scalar_lea.vmem %s305_s21, 32 }
  0xa0   : > { %p1364_p13 = scmp.ne.s32.totalorder %s305_s21, %s1363_s9  ;;  %p1371_p8 = scmp.lt.s32.totalorder %s305_s21, %s305_s21 }
  0xa1   : > { %p1372_p9 = scmp.lt.s32.totalorder %s1370_s13, %s1363_s9 }
  0xa2   : > { %p1366_p0 = pnand %p1364_p13, %p1697_p3 }
  0xa3   : > { %p1373_p10 = por %p1372_p9, %p1371_p8 }
  0xa4   : > { %p1367_p7 = pneg %p1366_p0 }
  0xa6   : > { %p1374_p1 = pnand %p1373_p10, %p1367_p7 }
  0xa8   : > { %1377 = shalt.err (!%p1374_p1)
}
  0xa9   : > { %1116 = dma.hbm_to_vmem [thread:$0]  (!%p1683_p2), %s2008_s4, 16, %s305_s21, [#allocation9]  }
  0xaa   : > { %s1554_s14 = smov [#allocation13]   ;;  %s1555_s28 = smov [#allocation16]  }
  0xab   : > { %s328_s16 = sshll.u32 %s1554_s14, 4  ;;  %s352_s1 = sshll.u32 %s1555_s28, 4  ;;  %s329_s16 = int_to_ptr.vmem [resolvable:$true] %s328_s16  ;;  %s353_s1 = int_to_ptr.vmem [resolvable:$true] %s352_s1 }
  0xac   : > { %s1378_s17 = scalar_lea.hbm %s2010_s6, 16 }
  0xad   : > { %p1379_p4 = scmp.ne.s32.totalorder %s2010_s6, %s1378_s17  ;;  %p1385_p11 = scmp.lt.u32.totalorder %s1378_s17, %s2010_s6 }
  0xaf   : > { %p1381_p5 = pnand %p1379_p4, %p1697_p3 }
  0xb1   : > { %p1382_p6 = pneg %p1381_p5 }
  0xb3   : > { %p1387_p12 = pnand %p1385_p11, %p1382_p6 }
  0xb5   : > { %1390 = shalt.err (!%p1387_p12)
}
  0xb6   : > { %s1391_s21 = scalar_lea.vmem %s329_s16, 16  ;;  %s1398_s13 = scalar_lea.vmem %s329_s16, 32 }
  0xb7   : > { %p1392_p13 = scmp.ne.s32.totalorder %s329_s16, %s1391_s21  ;;  %p1399_p8 = scmp.lt.s32.totalorder %s329_s16, %s329_s16 }
  0xb8   : > { %p1400_p9 = scmp.lt.s32.totalorder %s1398_s13, %s1391_s21 }
  0xb9   : > { %p1394_p0 = pnand %p1392_p13, %p1697_p3 }
  0xba   : > { %p1401_p10 = por %p1400_p9, %p1399_p8 }
  0xbb   : > { %p1395_p7 = pneg %p1394_p0 }
  0xbd   : > { %p1402_p1 = pnand %p1401_p10, %p1395_p7 }
  0xbf   : > { %1405 = shalt.err (!%p1402_p1)
}
  0xc0   : > { %1122 = dma.hbm_to_vmem [thread:$0]  (!%p1683_p2), %s2010_s6, 16, %s329_s16, [#allocation12]  }
  0xc1   : > { %s1406_s30 = scalar_lea.hbm %s2012_s8, 16 }
  0xc2   : > { %p1407_p4 = scmp.ne.s32.totalorder %s2012_s8, %s1406_s30  ;;  %p1413_p11 = scmp.lt.u32.totalorder %s1406_s30, %s2012_s8 }
  0xc4   : > { %p1409_p5 = pnand %p1407_p4, %p1697_p3 }
  0xc6   : > { %p1410_p6 = pneg %p1409_p5 }
  0xc8   : > { %p1415_p12 = pnand %p1413_p11, %p1410_p6 }
  0xca   : > { %1418 = shalt.err (!%p1415_p12)
}
  0xcb   : > { %s1419_s25 = scalar_lea.vmem %s353_s1, 16  ;;  %s1426_s16 = scalar_lea.vmem %s353_s1, 32 }
  0xcc   : > { %p1420_p13 = scmp.ne.s32.totalorder %s353_s1, %s1419_s25  ;;  %p1427_p8 = scmp.lt.s32.totalorder %s353_s1, %s353_s1 }
  0xcd   : > { %p1428_p9 = scmp.lt.s32.totalorder %s1426_s16, %s1419_s25 }
  0xce   : > { %p1422_p0 = pnand %p1420_p13, %p1697_p3 }
  0xcf   : > { %p1429_p10 = por %p1428_p9, %p1427_p8 }
  0xd0   : > { %p1423_p7 = pneg %p1422_p0 }
  0xd2   : > { %p1430_p1 = pnand %p1429_p10, %p1423_p7 }
  0xd4   : > { %1433 = shalt.err (!%p1430_p1)
}
  0xd5   : > { %1128 = dma.hbm_to_vmem [thread:$0]  (!%p1683_p2), %s2012_s8, 16, %s353_s1, [#allocation15]  }
  0xd6   : > { %p968_p4 = scmp.ge.s32.totalorder %s1544_s12, 2 }
  0xd7   : > { %p2042_p3 = scmp.ne.s32.totalorder (!%p968_p4), %s2032_s19, 0 }
  0xd8   : > { %359 = sbr.rel (%p968_p4) target bundleno = 258 (0x102), region = 48 }
  0xdf   : > { %362 = sbr.rel (!%p2042_p3) target bundleno = 258 (0x102), region = 52  ;;  %s363_s24 = sand.u32 (%p2042_p3), 1, %s1540_s11  }
  0xe0   : > { %s970_s13 = sshll.u32 (%p2042_p3), %s1544_s12, 1  ;;  %s969_s22 = sshll.u32 (%p2042_p3), %s363_s24, 4 }
  0xe1   : > { %s369_s18 = ssub.s32 (%p2042_p3), 3, %s970_s13  ;;  %s1866_s14 = scalar_lea.sflag (%p2042_p3), [#allocation3], %s363_s24 }
  0xe2   : > { %p370_p5 = scmp.lt.s32.totalorder (%p2042_p3), %s369_s18, 2  ;;  %s367_s28 = scalar_lea.vmem (%p2042_p3), [#allocation2], %s969_s22 }
  0xe6   : > { %s2067_s18 = smov (!%p370_p5, %s369_s18), 2 }
  0xe7   : > { %s1863_s26 = sshll.u32 %s2067_s18, 7 }
  0xe8   : > { %s374_s1 = ssub.s32 256, %s1863_s26 }
  0xe9   : > { %375 = vsyncadd %s1866_s14, %s374_s1  ;;  %p972_p2 = scmp.ne.s32.totalorder %s1863_s26, 0  ;;  %s1015_s19 = sshll.u32 %s1544_s12, 8 }
  0xea   : > { %s1874_s17 = scalar_lea.hbm %s2004_s0, %s1015_s19  ;;  %s380_s27 = sshll.u32 %s367_s28, 4  ;;  %s1876_s27 = int_to_ptr.vmem [resolvable:$true] %s380_s27 }
  0xeb   : > { %s1434_s29 = scalar_lea.hbm %s1874_s17, %s1863_s26  ;;  %s1438_s9 = scalar_lea.hbm %s2004_s0, 384 }
  0xec   : > { %p1435_p6 = scmp.ne.s32.totalorder %s1874_s17, %s1434_s29  ;;  %p1439_p13 = scmp.lt.u32.totalorder %s1874_s17, %s2004_s0 }
  0xed   : > { %p1440_p0 = scmp.lt.u32.totalorder %s1438_s9, %s1434_s29  ;;  %p1442_p8 = scmp.lt.u32.totalorder %s1434_s29, %s1874_s17 }
  0xee   : > { %p1436_p11 = pnand %p1435_p6, %p972_p2 }
  0xef   : > { %p1441_p7 = por %p1440_p0, %p1439_p13 }
  0xf0   : > { %p1437_p12 = pneg %p1436_p11 }
  0xf1   : > { %p1443_p9 = por %p1442_p8, %p1441_p7 }
  0xf3   : > { %p1444_p10 = pnand %p1443_p9, %p1437_p12 }
  0xf5   : > { %1447 = shalt.err (!%p1444_p10)
}
  0xf6   : > { %s1448_s13 = scalar_lea.vmem %s1876_s27, %s1863_s26  ;;  %s1556_s22 = smov [#allocation2]  }
  0xf7   : > { %p1449_p1 = scmp.ne.s32.totalorder %s1876_s27, %s1448_s13  ;;  %s1452_s18 = sshll.u32 %s1556_s22, 4  ;;  %s1453_s18 = int_to_ptr.vmem [resolvable:$false] %s1452_s18 }
  0xf8   : > { %s1454_s1 = scalar_lea.vmem %s1453_s18, 512  ;;  %p1455_p6 = scmp.lt.s32.totalorder %s1876_s27, %s1453_s18 }
  0xf9   : > { %p1450_p3 = pnand %p1449_p1, %p972_p2  ;;  %p1456_p11 = scmp.lt.s32.totalorder %s1454_s1, %s1448_s13 }
  0xfb   : > { %p1451_p5 = pneg %p1450_p3  ;;  %p1457_p13 = por %p1456_p11, %p1455_p6 }
  0xfd   : > { %p1458_p0 = pnand %p1457_p13, %p1451_p5 }
  0xff   : > { %1461 = shalt.err (!%p1458_p0)
}
 0x100   : > { %s1557_s28 = smov 128   ;;  %s1558_s19 = smov 8  }
 0x101   : > { %386 = dma.hbm_to_vmem [thread:$0]  (%p972_p2), %s1874_s17, %s1863_s26, %s1876_s27, %s1866_s14, %s1557_s28, %s1557_s28, %s1558_s19  }
 0x102 PF: > { %p2043_p12 = scmp.ne.s32.totalorder %s2038_s23, 0 }
 0x103   : > { %s1906_s30 = sand.u32 (!%p2043_p12), 1, %s1536_s10   ;;  %p2044_p7 = scmp.ne.s32.totalorder (!%p2043_p12), %s2033_s20, 0 }
 0x104   : > { %392 = sbr.rel (%p2043_p12) target bundleno = 1210 (0x4ba), region = 56  ;;  %s977_s15 = sshll.u32 (!%p2043_p12), %s1906_s30, 4 }
 0x105   : > { %s395_s29 = scalar_lea.sflag (!%p2043_p12), [#allocation3], %s1906_s30  ;;  %s1912_s25 = scalar_lea.vmem (!%p2043_p12), [#allocation2], %s977_s15 }
 0x10b   : > { %1507 = dma.done.wait (%p2044_p7), %s395_s29, 256  }
 0x10c   : > { %1509 = vsyncadd (%p2044_p7), %s395_s29, 4294967040  ;;  %s2045_s26 = sld [smem:[#allocation25_spill]] }
 0x112   : > { %p2046_p2 = scmp.eq.s32.totalorder %s2045_s26, 0 }
 0x114   : > { %1511 = dma.done.wait (%p2046_p2), [#allocation6], 464   ;;  %p2047_p8 = pmov %p2046_p2 }
 0x115   : > { %p2048_p9 = pmov %p2046_p2 }
 0x116   : > { %1513 = vsyncadd (%p2047_p8), [#allocation6], 4294966832 }
 0x117   : > { %1515 = dma.done.wait (%p2048_p9), [#allocation9], 528   ;;  %p2049_p10 = pmov %p2046_p2 }
 0x118   : > { %p2050_p1 = pmov %p2046_p2 }
 0x119   : > { %1517 = vsyncadd (%p2049_p10), [#allocation9], 4294966768 }
 0x11a   : > { %1519 = dma.done.wait (%p2050_p1), [#allocation12], 272   ;;  %p2051_p3 = pmov %p2050_p1 }
 0x11b   : > { %p2052_p5 = pmov %p2050_p1 }
 0x11c   : > { %1521 = vsyncadd (%p2051_p3), [#allocation12], 4294967024 }
 0x11d   : > { %1523 = dma.done.wait (%p2052_p5), [#allocation15], 144   ;;  %p2053_p6 = pmov %p2050_p1 }
 0x11e   : > { %v1559_v0 = vmov 0.0   ;;  %vm1560_vm0 = vmmov 0   ;;  %v1199_v1 = vld [vmem:[#allocation5] sm:$0xff]   ;;  %vm518_vm1 = vcmask 1040384   ;;  %v1200_v2 = vld [vmem:[#allocation5 + $0x8] sm:$0xff]   ;;  %v1201_v3 = vld [vmem:[#allocation5 + $0x10] sm:$0xff]  }
 0x11f   : > { %1525 = vsyncadd (%p2053_p6), [#allocation15], 4294967152  ;;  %1032 = vmatprep.subr.bf16.mxu0 %v1559_v0  ;;  %1040 = vmatprep.mubr.msk.bf16.mxu0 %vm1560_vm0, %v1559_v0  ;;  %v1561_v4 = vmov 0   ;;  %v1203_v6 = vld [vmem:[#allocation8] sm:$0xff]   ;;  %v1204_v8 = vld [vmem:[#allocation8 + $0x8] sm:$0xff]   ;;  %vm514_vm2 = vcmask 400384  }
 0x120   : > { %1044 = vmatprep.subr.bf16.mxu1 %v1559_v0  ;;  %1052 = vmatprep.mubr.msk.bf16.mxu1 %vm1560_vm0, %v1559_v0  ;;  %v520_v5 = vsel %vm518_vm1, 65535, %v1561_v4  ;;  %v1202_v7 = vld [vmem:[#allocation5 + $0x18] ss:$0 sps:$4 sm:$0x11]   ;;  %v476_v10 = vld [vmem:[%s1912_s25] sm:$0xff]  ;;  %vm607_vm3 = vcmask 523264  }
 0x121   : > { %1033 = vmatpush3.bf16.msra.mxu0 %v1199_v1  ;;  %1045 = vmatpush3.bf16.msra.mxu1 %v1203_v6  ;;  %v522_v9 = vand.u32 %v1202_v7, %v520_v5  ;;  %v477_v11 = vld [vmem:[%s1912_s25 + $0x8] sm:$0xff]  ;;  %v1207_v25 = vld [vmem:[#allocation11] sm:$0xff]   ;;  %vm678_vm4 = vcmask 261120   ;;  %v999_v38 = vld [vmem:[#allocation13] ss:$0 sm:$0xff]  ;;  %vm741_vm5 = vcmask 130048  }
 0x122   : > { %1034 = vmatprep.subr.bf16.mxu0 %v1559_v0  ;;  %1046 = vmatprep.subr.bf16.mxu1 %v1559_v0  ;;  %v478_v12 = vpack.c.bf16 %v477_v11, %v476_v10  ;;  %v1205_v13 = vld [vmem:[#allocation8 + $0x10] sm:$0xff]   ;;  %v1206_v14 = vld [vmem:[#allocation8 + $0x18] sm:$0xff]   ;;  %v993_v27 = vld [vmem:[#allocation10] ss:$0 sm:$0xff]  ;;  %vm786_vm6 = vcmask 244736   ;;  %s464_s20 = scalar_lea.vmem [#allocation17], %s977_s15 }
 0x123   : > { %v987_v15 = vld [vmem:[#allocation7] ss:$0 sm:$0xff]  ;;  %v1208_v26 = vld [vmem:[#allocation11 + $0x8] sm:$0xff]   ;;  %v1209_v37 = vld [vmem:[#allocation14] sm:$0xff]   ;;  %s790_s23 = scalar_lea.sflag [#allocation4], %s1906_s30  ;;  %s2054_s14 = sld [smem:[#allocation28_spill]] }
 0x124   : > { %v1003_v48 = vld [vmem:[#allocation16] ss:$0 sm:$0xff] }
 0x125   : > { %1035 = vmatpush3.bf16.msra.mxu0 %v1200_v2  ;;  %1047 = vmatpush3.bf16.msra.mxu1 %v1204_v8 }
 0x126   : > { %1036 = vmatprep.subr.bf16.mxu0 %v1559_v0  ;;  %1048 = vmatprep.subr.bf16.mxu1 %v1559_v0 }
 0x129   : > { %1037 = vmatpush3.bf16.msra.mxu0 %v1201_v3  ;;  %1049 = vmatpush3.bf16.msra.mxu1 %v1205_v13  ;;  %p2055_p11 = scmp.ne.s32.totalorder %s2054_s14, 0 }
 0x12a   : > { %1038 = vmatprep.subr.bf16.mxu0 %v1559_v0  ;;  %1050 = vmatprep.subr.bf16.mxu1 %v1559_v0  ;;  %s2056_s17 = sld [smem:[#allocation25_spill]] (%p2055_p11) }
 0x12d   : > { %1039 = vmatpush3.bf16.msra.mxu0 %v522_v9  ;;  %1051 = vmatpush3.bf16.msra.mxu1 %v1206_v14 }
 0x12e   : > { %1056 = vmatprep.subr.bf16.mxu0 %v1559_v0  ;;  %1064 = vmatprep.subr.bf16.mxu1 %v1559_v0 }
 0x130   : > { %1041 = vmatmul.mubr.msk.bf16.vlgmr.msra.gmra.mrb[0].mxu0 %vm514_vm2, %v478_v12  ;;  %s1007_s27 = sshll.u32 (%p2055_p11), %s2056_s17, 1 }
 0x131   : > { %1060 = vmatprep.mubr.msk.bf16.mxu0 %vm1560_vm0, %v1559_v0  ;;  %1057 = vmatpush3.bf16.msra.mxu0 %v1207_v25  ;;  %s798_s16 = ssub.s32 (%p2055_p11), 3, %s1007_s27 }
 0x132   : > { %1058 = vmatprep.subr.bf16.mxu0 %v1559_v0  ;;  %p799_p13 = scmp.lt.s32.totalorder (%p2055_p11), %s798_s16, 2 }
 0x135   : > { %1059 = vmatpush3.bf16.msra.mxu0 %v1208_v26 }
 0x203   : > { %v558_v16 = vpop.f32.mrb[0].mxu0 }
 0x204   : > { %v559_v17 = vadd.f32 %v987_v15, %v558_v16  ;;  %v1042_v18 = vpop.f32.mrb[1].mxu0 }
 0x205   : > { %v561_v19 = vpop.f32.mrb[2].mxu0 }
 0x206   : > { %v562_v20 = vadd.f32 %v987_v15, %v561_v19  ;;  %v1043_v21 = vpop.f32.mrb[3].mxu0  ;;  %v565_v22 = vmax.f32 %v559_v17, 0.0 }
 0x208   : > { %v566_v23 = vmax.f32 %v562_v20, 0.0 }
 0x20a   : > { %v567_v24 = vpack.c.bf16 %v566_v23, %v565_v22 }
 0x20c   : > { %1053 = vmatmul.mubr.msk.bf16.vlgmr.msra.gmra.mrb[0].mxu1 %vm607_vm3, %v567_v24 }
 0x20d   : > { %1066 = vmatprep.mubr.msk.bf16.mxu1 %vm1560_vm0, %v1559_v0  ;;  %1065 = vmatpush3.bf16.msra.mxu1 %v1209_v37 }
 0x2df   : > { %v645_v28 = vpop.f32.mrb[0].mxu1 }
 0x2e0   : > { %v646_v29 = vadd.f32 %v993_v27, %v645_v28  ;;  %v1054_v30 = vpop.f32.mrb[1].mxu1 }
 0x2e1   : > { %v648_v31 = vpop.f32.mrb[2].mxu1 }
 0x2e2   : > { %v649_v32 = vadd.f32 %v993_v27, %v648_v31  ;;  %v1055_v33 = vpop.f32.mrb[3].mxu1  ;;  %v652_v34 = vmax.f32 %v646_v29, 0.0 }
 0x2e4   : > { %v653_v35 = vmax.f32 %v649_v32, 0.0 }
 0x2e6   : > { %v654_v36 = vpack.c.bf16 %v653_v35, %v652_v34 }
 0x2e8   : > { %1061 = vmatmul.mubr.msk.bf16.vlgmr.msra.gmra.mrb[4].mxu0 %vm678_vm4, %v654_v36 }
 0x3bb   : > { %v716_v39 = vpop.f32.mrb[4].mxu0 }
 0x3bc   : > { %v717_v40 = vadd.f32 %v999_v38, %v716_v39  ;;  %v1062_v41 = vpop.f32.mrb[5].mxu0 }
 0x3bd   : > { %v719_v42 = vpop.f32.mrb[6].mxu0 }
 0x3be   : > { %v720_v43 = vadd.f32 %v999_v38, %v719_v42  ;;  %v1063_v44 = vpop.f32.mrb[7].mxu0  ;;  %v723_v45 = vmax.f32 %v717_v40, 0.0 }
 0x3c0   : > { %v724_v46 = vmax.f32 %v720_v43, 0.0 }
 0x3c2   : > { %v725_v47 = vpack.c.bf16 %v724_v46, %v723_v45 }
 0x3c4   : > { %1067 = vmatmul.mubr.msk.bf16.vlgmr.msra.gmra.mrb[4].mxu1 %vm741_vm5, %v725_v47 }
 0x496   : > { %796 = sbr.rel (!%p2055_p11) target bundleno = 1210 (0x4ba), region = 96 }
 0x497   : > { %v779_v49 = vpop.f32.mrb[4].mxu1 }
 0x498   : > { %v780_v50 = vadd.f32 %v1003_v48, %v779_v49  ;;  %v1068_v51 = vpop.f32.mrb[5].mxu1 }
 0x499   : > { %v782_v52 = vpop.f32.mrb[6].mxu1 }
 0x49a   : > { %787 = vst.msk [vmem:[%s464_s20] sm:$0xff] %vm786_vm6, %v780_v50  ;;  %v783_v53 = vadd.f32 %v1003_v48, %v782_v52  ;;  %v1069_v54 = vpop.f32.mrb[7].mxu1 }
 0x49c   : > { %788 = vst.msk [vmem:[%s464_s20 + $0x8] sm:$0xff] %vm786_vm6, %v783_v53 }
 0x49d   : > { %s2069_s16 = smov (!%p799_p13, %s798_s16), 2 }
 0x49e   : > { %s1946_s9 = sshll.u32 %s2069_s16, 7 }
 0x49f   : > { %s803_s21 = ssub.s32 256, %s1946_s9 }
 0x4a0   : > { %804 = vsyncadd %s790_s23, %s803_s21  ;;  %p1009_p0 = scmp.ne.s32.totalorder %s1946_s9, 0  ;;  %s1016_s24 = sshll.u32 %s2056_s17, 8 }
 0x4a1   : > { %s2057_s18 = sld [smem:[#allocation31_spill]]  ;;  %s809_s28 = sshll.u32 %s464_s20, 4  ;;  %s1958_s28 = int_to_ptr.vmem [resolvable:$true] %s809_s28 }
 0x4a2   : > { %s1462_s19 = scalar_lea.vmem %s1958_s28, %s1946_s9  ;;  %s1562_s15 = smov [#allocation17]  }
 0x4a3   : > { %p1463_p12 = scmp.ne.s32.totalorder %s1958_s28, %s1462_s19  ;;  %s1466_s29 = sshll.u32 %s1562_s15, 4  ;;  %s1467_s29 = int_to_ptr.vmem [resolvable:$false] %s1466_s29 }
 0x4a4   : > { %s1468_s25 = scalar_lea.vmem %s1467_s29, 512  ;;  %p1469_p8 = scmp.lt.s32.totalorder %s1958_s28, %s1467_s29 }
 0x4a5   : > { %p1464_p7 = pnand %p1463_p12, %p1009_p0  ;;  %p1470_p9 = scmp.lt.s32.totalorder %s1468_s25, %s1462_s19 }
 0x4a7   : > { %s1956_s1 = scalar_lea.hbm %s2057_s18, %s1016_s24  ;;  %p1465_p2 = pneg %p1464_p7 }
 0x4a8   : > { %p1471_p10 = por %p1470_p9, %p1469_p8 }
 0x4aa   : > { %p1472_p1 = pnand %p1471_p10, %p1465_p2 }
 0x4ac   : > { %1475 = shalt.err (!%p1472_p1)
}
 0x4ad   : > { %s1476_s26 = scalar_lea.hbm %s1956_s1, %s1946_s9  ;;  %s1480_s17 = scalar_lea.hbm %s2057_s18, 384 }
 0x4ae   : > { %p1477_p3 = scmp.ne.s32.totalorder %s1956_s1, %s1476_s26  ;;  %p1481_p11 = scmp.lt.u32.totalorder %s1956_s1, %s2057_s18 }
 0x4af   : > { %p1482_p13 = scmp.lt.u32.totalorder %s1480_s17, %s1476_s26  ;;  %p1484_p7 = scmp.lt.u32.totalorder %s1476_s26, %s1956_s1 }
 0x4b0   : > { %p1478_p5 = pnand %p1477_p3, %p1009_p0 }
 0x4b1   : > { %p1483_p12 = por %p1482_p13, %p1481_p11 }
 0x4b2   : > { %p1479_p6 = pneg %p1478_p5 }
 0x4b3   : > { %p1485_p2 = por %p1484_p7, %p1483_p12 }
 0x4b5   : > { %p1486_p8 = pnand %p1485_p2, %p1479_p6 }
 0x4b7   : > { %1489 = shalt.err (!%p1486_p8)
}
 0x4b8   : > { %s1563_s21 = smov 128   ;;  %s1564_s24 = smov 8  }
 0x4b9   : > { %815 = dma.vmem_to_hbm [thread:$0]  (%p1009_p0), %s1958_s28, %s1946_s9, %s1956_s1, %s790_s23, %s1563_s21, %s1563_s21, %s1564_s24  }
 0x4ba PF: > { %s2058_s13 = sld [smem:[#allocation24_spill]]  ;;  %s2059_s22 = sld [smem:[#allocation29_spill]] }
 0x4c0   : > { %s824_s19 = sand.u32 1, %s2058_s13   ;;  %p2060_p9 = scmp.ne.s32.totalorder %s2059_s22, 0 }
 0x4c1   : > { %s825_s15 = scalar_lea.sflag [#allocation4], %s824_s19 }
 0x4c2   : > { %p1130_p10 = pnand %p968_p4, %p2060_p9 }
 0x4c4   : > { %1527 = dma.done.wait (!%p1130_p10), %s825_s15, 256  }
 0x4c5   : > { %1529 = vsyncadd (!%p1130_p10), %s825_s15, 4294967040  ;;  %s2061_s12 = sld [smem:[#allocation26_spill]]  ;;  %s2062_s29 = sld [smem:[#allocation27_spill]] }
 0x4c6   : > { %s2063_s30 = smov %s1536_s10  ;;  %s2064_s10 = smov %s1540_s11 }
 0x4cb   : > { %p26_p1 = scmp.ge.s32.totalorder %s2061_s12, 4   ;;  %s2065_s11 = smov %s2062_s29 }
 0x4cd   :  { %28 = sbr.rel (!%p26_p1) target bundleno = 12 (0xc), region = 133 }
 0x4d4   :  { %830 = vsyncpa [#allocation3], 1 }
 0x4d5   :  { %832 = vsyncpa [#allocation3 + $0x1], 1 }
 0x4d6   :  { %833 = vsyncpa [#allocation6], 1 }
 0x4d7   :  { %834 = vsyncpa [#allocation9], 1 }
 0x4d8   :  { %835 = vsyncpa [#allocation12], 1 }
 0x4d9   :  { %836 = vsyncpa [#allocation15], 1 }
 0x4da   :  { %837 = vsyncpa [#allocation4], 1 }
 0x4db   :  { %839 = vsyncpa [#allocation4 + $0x1], 1 }

</bundles_post_ra>
